<compile_context>
chip_gen: v7x
topology: tpu7x:2x2x1
jax: 0.10.0
libtpu: 0.0.40
codegen_flags: <defaults>
</compile_context>

<pallas_src>
import math
import functools

import jax
import jax.numpy as jnp
from jax import lax
from jax.experimental import pallas as pl
from jax.experimental.pallas import tpu as pltpu


# MXU operand dtype (accumulation is always f32).
MXU_DTYPE = jnp.bfloat16
# Inter-kernel activation dtype for memory-bound intermediates (QKV,
# attention output, FFN hidden).  Residual stream / LN outputs stay f32.
ACT_DTYPE = jnp.bfloat16


# ---------------------------------------------------------------------------
# Tile-size helper: biggest tile <= target that is a multiple of `multiple`
# and evenly divides the dim; otherwise fall back to the full dimension
# (a full-extent block is always a legal BlockSpec).
# ---------------------------------------------------------------------------
def _pick_tile(dim, target, multiple):
    if dim <= target:
        return dim
    t = (target // multiple) * multiple
    while t >= multiple:
        if dim % t == 0:
            return t
        t -= multiple
    return dim  # awkward dim: use the full extent (still legal, may cost VMEM)


# ---------------------------------------------------------------------------
# Kernel 1: tiled linear  y = x @ W + b  (optional ReLU).
# K axis is the reduction axis ("arbitrary"); M/N axes are "parallel".
# MXU operands cast to bf16, accumulation in f32.
# ---------------------------------------------------------------------------
def _matmul_kernel(x_ref, w_ref, b_ref, o_ref, acc_ref, *, activation):
    @pl.when(pl.program_id(2) == 0)
    def _():
        acc_ref[...] = jnp.zeros_like(acc_ref)

    acc_ref[...] += jnp.dot(x_ref[...].astype(MXU_DTYPE),
                            w_ref[...].astype(MXU_DTYPE),
                            preferred_element_type=jnp.float32)

    @pl.when(pl.program_id(2) == pl.num_programs(2) - 1)
    def _():
        y = acc_ref[...] + b_ref[...].astype(jnp.float32)
        if activation == "relu":
            y = jnp.maximum(y, 0.0)
        o_ref[...] = y.astype(o_ref.dtype)


def linear(x2d, w, b, activation=None, out_dtype=None, *,
           tm=256, tn=256, tk=512):
    M, K = x2d.shape
    Kw, N = w.shape
    assert K == Kw
    out_dtype = x2d.dtype if out_dtype is None else out_dtype
    tm = _pick_tile(M, tm, 8)
    tn = _pick_tile(N, tn, 128)
    tk = _pick_tile(K, tk, 128)
    grid = (M // tm, N // tn, K // tk)
    return pl.pallas_call(
        functools.partial(_matmul_kernel, activation=activation),
        out_shape=jax.ShapeDtypeStruct((M, N), out_dtype),
        grid=grid,
        in_specs=[
            pl.BlockSpec((tm, tk), lambda i, j, k: (i, k)),
            pl.BlockSpec((tk, tn), lambda i, j, k: (k, j)),
            pl.BlockSpec((1, tn), lambda i, j, k: (0, j)),
        ],
        out_specs=pl.BlockSpec((tm, tn), lambda i, j, k: (i, j)),
        scratch_shapes=[pltpu.VMEM((tm, tn), jnp.float32)],
        compiler_params=pltpu.CompilerParams(
            dimension_semantics=("parallel", "parallel", "arbitrary")),
    )(x2d, w, b.reshape(1, N))


# ---------------------------------------------------------------------------
# Kernel 2: tiled linear with fused residual-add + LayerNorm epilogue.
# Output tile spans the full feature dim N (= d_model) so the LN reduction
# is local to the tile.  Grid = (M/tm, K/tk); K is the reduction axis.
# Smaller K tile (256) keeps weight block + f32 accumulator within the v7x
# VMEM budget; LN statistics in f32.
# ---------------------------------------------------------------------------
def _matmul_add_ln_kernel(x_ref, w_ref, b_ref, r_ref, g_ref, bln_ref,
                          o_ref, acc_ref, *, eps):
    @pl.when(pl.program_id(1) == 0)
    def _():
        acc_ref[...] = jnp.zeros_like(acc_ref)

    acc_ref[...] += jnp.dot(x_ref[...].astype(MXU_DTYPE),
                            w_ref[...].astype(MXU_DTYPE),
                            preferred_element_type=jnp.float32)

    @pl.when(pl.program_id(1) == pl.num_programs(1) - 1)
    def _():
        y = (acc_ref[...] + b_ref[...].astype(jnp.float32)
             + r_ref[...].astype(jnp.float32))
        mean = jnp.mean(y, axis=-1, keepdims=True)
        var = jnp.mean(jnp.square(y - mean), axis=-1, keepdims=True)
        yn = (y - mean) * lax.rsqrt(var + eps)
        o_ref[...] = (yn * g_ref[...].astype(jnp.float32)
                      + bln_ref[...].astype(jnp.float32)).astype(o_ref.dtype)


def linear_add_layernorm(x2d, w, b, res2d, gamma, beta, *, eps=1e-5,
                         tm=256, tk=256):
    M, K = x2d.shape
    Kw, N = w.shape
    assert K == Kw and res2d.shape == (M, N)
    tm = _pick_tile(M, tm, 8)
    tk = _pick_tile(K, tk, 128)
    grid = (M // tm, K // tk)
    return pl.pallas_call(
        functools.partial(_matmul_add_ln_kernel, eps=eps),
        out_shape=jax.ShapeDtypeStruct((M, N), res2d.dtype),
        grid=grid,
        in_specs=[
            pl.BlockSpec((tm, tk), lambda i, k: (i, k)),
            pl.BlockSpec((tk, N), lambda i, k: (k, 0)),
            pl.BlockSpec((1, N), lambda i, k: (0, 0)),
            pl.BlockSpec((tm, N), lambda i, k: (i, 0)),
            pl.BlockSpec((1, N), lambda i, k: (0, 0)),
            pl.BlockSpec((1, N), lambda i, k: (0, 0)),
        ],
        out_specs=pl.BlockSpec((tm, N), lambda i, k: (i, 0)),
        scratch_shapes=[pltpu.VMEM((tm, N), jnp.float32)],
        compiler_params=pltpu.CompilerParams(
            dimension_semantics=("parallel", "arbitrary")),
    )(x2d, w, b.reshape(1, N), res2d, gamma.reshape(1, N), beta.reshape(1, N))


# ---------------------------------------------------------------------------
# Kernel 3: scaled-dot-product attention.  One batch element per grid step.
# q/k/v arrive as the raw fused-projection outputs ((B,S,3D) for self-attn,
# (B,Sq,D)+(B,Sk,2D) for cross-attn); heads and the q/k/v segments are lane
# slices taken in-kernel.  Per-head results are stored into lane slices of an
# f32 VMEM scratch; one lane-dense (Sq, D) store at the end.
# ---------------------------------------------------------------------------
def _mha_head_loop(q, kv, k_off, v_off, mask, acc_ref, *, n_heads, dk, scale):
    for h in range(n_heads):
        qh = q[:, h * dk:(h + 1) * dk].astype(MXU_DTYPE)
        kh = kv[:, k_off + h * dk:k_off + (h + 1) * dk].astype(MXU_DTYPE)
        vh = kv[:, v_off + h * dk:v_off + (h + 1) * dk].astype(MXU_DTYPE)
        # Contract the dk axes directly -> no materialized transpose of K.
        s = lax.dot_general(qh, kh, (((1,), (1,)), ((), ())),
                            preferred_element_type=jnp.float32) * scale
        s = s + mask
        s = s - jnp.max(s, axis=-1, keepdims=True)
        p = jnp.exp(s)
        p = p * pl.reciprocal(jnp.sum(p, axis=-1, keepdims=True), approx=True)
        acc_ref[:, h * dk:(h + 1) * dk] = jnp.dot(
            p.astype(MXU_DTYPE), vh, preferred_element_type=jnp.float32)


def _self_attn_kernel(qkv_ref, m_ref, o_ref, acc_ref, *,
                      n_heads, dk, d_model, scale):
    qkv = qkv_ref[0]                           # (S, 3D)
    mask = m_ref[...].astype(jnp.float32)      # (S, S) additive, f32
    _mha_head_loop(qkv, qkv, d_model, 2 * d_model, mask, acc_ref,
                   n_heads=n_heads, dk=dk, scale=scale)
    o_ref[0] = acc_ref[...].astype(o_ref.dtype)


def _cross_attn_kernel(q_ref, kv_ref, m_ref, o_ref, acc_ref, *,
                       n_heads, dk, d_model, scale):
    q = q_ref[0]                               # (Sq, D)
    kv = kv_ref[0]                             # (Sk, 2D)
    mask = m_ref[...].astype(jnp.float32)      # (Sq, Sk)
    _mha_head_loop(q, kv, 0, d_model, mask, acc_ref,
                   n_heads=n_heads, dk=dk, scale=scale)
    o_ref[0] = acc_ref[...].astype(o_ref.dtype)


def self_attention_fused(qkv, mask, n_heads, out_dtype):
    B, S, three_d = qkv.shape
    D = three_d // 3
    dk = D // n_heads
    return pl.pallas_call(
        functools.partial(_self_attn_kernel, n_heads=n_heads, dk=dk,
                          d_model=D, scale=1.0 / math.sqrt(dk)),
        out_shape=jax.ShapeDtypeStruct((B, S, D), out_dtype),
        grid=(B,),
        in_specs=[
            pl.BlockSpec((1, S, three_d), lambda b: (b, 0, 0)),
            pl.BlockSpec((S, S), lambda b: (0, 0)),
        ],
        out_specs=pl.BlockSpec((1, S, D), lambda b: (b, 0, 0)),
        scratch_shapes=[pltpu.VMEM((S, D), jnp.float32)],
        compiler_params=pltpu.CompilerParams(
            dimension_semantics=("parallel",)),
    )(qkv, mask)


def cross_attention_fused(q, kv, mask, n_heads, out_dtype):
    B, Sq, D = q.shape
    Sk = kv.shape[1]
    dk = D // n_heads
    return pl.pallas_call(
        functools.partial(_cross_attn_kernel, n_heads=n_heads, dk=dk,
                          d_model=D, scale=1.0 / math.sqrt(dk)),
        out_shape=jax.ShapeDtypeStruct((B, Sq, D), out_dtype),
        grid=(B,),
        in_specs=[
            pl.BlockSpec((1, Sq, D), lambda b: (b, 0, 0)),
            pl.BlockSpec((1, Sk, 2 * D), lambda b: (b, 0, 0)),
            pl.BlockSpec((Sq, Sk), lambda b: (0, 0)),
        ],
        out_specs=pl.BlockSpec((1, Sq, D), lambda b: (b, 0, 0)),
        scratch_shapes=[pltpu.VMEM((Sq, D), jnp.float32)],
        compiler_params=pltpu.CompilerParams(
            dimension_semantics=("parallel",)),
    )(q, kv, mask)


# ---------------------------------------------------------------------------
# Module glue.  dropout1/2/3 are identity (eval mode).
# ---------------------------------------------------------------------------
def decoder_layer(tgt, memory, tgt_mask, memory_mask, params, n_heads,
                  act_dtype=ACT_DTYPE):
    B, S, D = tgt.shape
    Sm = memory.shape[1]
    tgt2d = tgt.reshape(B * S, D)

    # --- Self-attention; out-projection fused with residual-add + LayerNorm1.
    sa = params["self_attn"]
    qkv = linear(tgt2d, sa["w_qkv"], sa["b_qkv"], out_dtype=act_dtype)
    attn = self_attention_fused(qkv.reshape(B, S, 3 * D), tgt_mask,
                                n_heads, act_dtype)
    tgt2d = linear_add_layernorm(attn.reshape(B * S, D), sa["wo"], sa["bo"],
                                 tgt2d, params["ln1_g"], params["ln1_b"])

    # --- Cross-attention; out-projection fused with residual-add + LayerNorm2.
    ca = params["cross_attn"]
    q = linear(tgt2d, ca["wq"], ca["bq"], out_dtype=act_dtype)
    kv = linear(memory.reshape(B * Sm, D), ca["w_kv"], ca["b_kv"],
                out_dtype=act_dtype)
    cross = cross_attention_fused(q.reshape(B, S, D), kv.reshape(B, Sm, 2 * D),
                                  memory_mask, n_heads, act_dtype)
    tgt2d = linear_add_layernorm(cross.reshape(B * S, D), ca["wo"], ca["bo"],
                                 tgt2d, params["ln2_g"], params["ln2_b"])

    # --- FFN: GEMM+ReLU, then GEMM fused with residual-add + LayerNorm3.
    h = linear(tgt2d, params["ff_w1"], params["ff_b1"], activation="relu",
               out_dtype=act_dtype)
    tgt2d = linear_add_layernorm(h, params["ff_w2"], params["ff_b2"],
                                 tgt2d, params["ln3_g"], params["ln3_b"])
    return tgt2d.reshape(B, S, D)


# ---------------------------------------------------------------------------
# Deterministic parameter init (PyTorch-style uniform(-1/sqrt(fan_in), ...)).
# ---------------------------------------------------------------------------
def init_linear(key, fan_in, fan_out):
    kw, kb = jax.random.split(key)
    bound = 1.0 / math.sqrt(fan_in)
    w = jax.random.uniform(kw, (fan_in, fan_out), jnp.float32, -bound, bound)
    b = jax.random.uniform(kb, (fan_out,), jnp.float32, -bound, bound)
    return w, b


def init_mha(key, d_model):
    ks = jax.random.split(key, 4)
    wq, bq = init_linear(ks[0], d_model, d_model)
    wk, bk = init_linear(ks[1], d_model, d_model)
    wv, bv = init_linear(ks[2], d_model, d_model)
    wo, bo = init_linear(ks[3], d_model, d_model)
    return dict(
        # fused forms (numerically identical to separate projections)
        w_qkv=jnp.concatenate([wq, wk, wv], axis=1),
        b_qkv=jnp.concatenate([bq, bk, bv], axis=0),
        w_kv=jnp.concatenate([wk, wv], axis=1),
        b_kv=jnp.concatenate([bk, bv], axis=0),
        wq=wq, bq=bq, wo=wo, bo=bo,
    )


def init_decoder_layer(key, d_model, d_ff):
    ks = jax.random.split(key, 4)
    w1, b1 = init_linear(ks[2], d_model, d_ff)
    w2, b2 = init_linear(ks[3], d_ff, d_model)
    return dict(
        self_attn=init_mha(ks[0], d_model),
        cross_attn=init_mha(ks[1], d_model),
        ff_w1=w1, ff_b1=b1, ff_w2=w2, ff_b2=b2,
        ln1_g=jnp.ones((d_model,), jnp.float32),
        ln1_b=jnp.zeros((d_model,), jnp.float32),
        ln2_g=jnp.ones((d_model,), jnp.float32),
        ln2_b=jnp.zeros((d_model,), jnp.float32),
        ln3_g=jnp.ones((d_model,), jnp.float32),
        ln3_b=jnp.zeros((d_model,), jnp.float32),
    )


if __name__ == "__main__":
    B, S_tgt, S_mem = 2, 8, 8
    d_model, n_heads, d_ff = 32, 4, 64

    key = jax.random.PRNGKey(0)
    k_par, k_tgt, k_mem = jax.random.split(key, 3)

    params = init_decoder_layer(k_par, d_model, d_ff)
    tgt = jax.random.normal(k_tgt, (B, S_tgt, d_model), jnp.float32)
    memory = jax.random.normal(k_mem, (B, S_mem, d_model), jnp.float32)

    # Causal additive mask for self-attention; no masking for cross-attention.
    # (Masks stay kernel inputs to match the module signature; a causal mask
    #  could alternatively be generated in-kernel via broadcasted_iota.)
    tgt_mask = jnp.where(
        jnp.tril(jnp.ones((S_tgt, S_tgt), jnp.bool_)), 0.0, -1e9
    ).astype(jnp.float32)
    memory_mask = jnp.zeros((S_tgt, S_mem), jnp.float32)

    out = decoder_layer(tgt, memory, tgt_mask, memory_mask, params, n_heads)
    jax.block_until_ready(out)
    assert out.shape == (B, S_tgt, d_model)
    assert bool(jnp.all(jnp.isfinite(out)))
    print("KERNEL_OK")
</pallas_src>

<mosaic_0001>
module attributes {stable_mosaic.version = 11 : i64} {
  func.func @_matmul_kernel(%arg0: i32, %arg1: i32, %arg2: i32, %arg3: memref<16x32xf32, #tpu.memory_space<vmem>>, %arg4: memref<32x96xf32, #tpu.memory_space<vmem>>, %arg5: memref<1x96xf32, #tpu.memory_space<vmem>>, %arg6: memref<16x96xbf16, #tpu.memory_space<vmem>>, %arg7: memref<16x96xf32, #tpu.memory_space<vmem>>) attributes {dimension_semantics = [#tpu.dimension_semantics<parallel>, #tpu.dimension_semantics<parallel>, #tpu.dimension_semantics<arbitrary>], iteration_bounds = array<i64: 1, 1, 1>, scalar_prefetch = 0 : i64, scratch_operands = 1 : i64, tpu.core_type = #tpu.core_type<tc>, window_params = [{transform_indices = @transform_0, window_bounds = array<i64: 16, 32>}, {transform_indices = @transform_1, window_bounds = array<i64: 32, 96>}, {transform_indices = @transform_2, window_bounds = array<i64: 1, 96>}, {transform_indices = @transform_3, window_bounds = array<i64: 16, 96>}]} {
    %c0_i32 = arith.constant 0 : i32
    %0 = arith.cmpi eq, %arg2, %c0_i32 : i32
    %1 = arith.extui %0 : i1 to i32
    %c0_i32_0 = arith.constant 0 : i32
    %2 = arith.cmpi ne, %1, %c0_i32_0 : i32
    scf.if %2 {
      %cst_10 = arith.constant 0.000000e+00 : f32
      %14 = vector.broadcast %cst_10 : f32 to vector<16x96xf32>
      %c0_11 = arith.constant 0 : index
      %c0_12 = arith.constant 0 : index
      %15 = vector.load %arg7[%c0_11, %c0_12] : memref<16x96xf32, #tpu.memory_space<vmem>>, vector<16x96xf32>
      tpu.vector_store %arg7[%c0_11, %c0_12], %14 {strides = array<i32>} : memref<16x96xf32, #tpu.memory_space<vmem>>, vector<16x96xf32>,
    } else {
    }
    %c0 = arith.constant 0 : index
    %c0_1 = arith.constant 0 : index
    %3 = vector.load %arg7[%c0, %c0_1] : memref<16x96xf32, #tpu.memory_space<vmem>>, vector<16x96xf32>
    %c0_2 = arith.constant 0 : index
    %c0_3 = arith.constant 0 : index
    %4 = vector.load %arg3[%c0_2, %c0_3] : memref<16x32xf32, #tpu.memory_space<vmem>>, vector<16x32xf32>
    %5 = arith.truncf %4 : vector<16x32xf32> to vector<16x32xbf16>
    %c0_4 = arith.constant 0 : index
    %c0_5 = arith.constant 0 : index
    %6 = vector.load %arg4[%c0_4, %c0_5] : memref<32x96xf32, #tpu.memory_space<vmem>>, vector<32x96xf32>
    %7 = arith.truncf %6 : vector<32x96xf32> to vector<32x96xbf16>
    %cst = arith.constant dense<0.000000e+00> : vector<16x96xf32>
    %8 = tpu.matmul %5, %7, %cst {dimension_numbers = #tpu.dot_dimension_numbers<[1], [0], [0], [1], [0, 0, 1, 1], [], []>} : vector<16x32xbf16>, vector<32x96xbf16>, vector<16x96xf32> -> vector<16x96xf32>
    %9 = arith.addf %3, %8 : vector<16x96xf32>
    %c0_6 = arith.constant 0 : index
    %c0_7 = arith.constant 0 : index
    %10 = vector.load %arg7[%c0_6, %c0_7] : memref<16x96xf32, #tpu.memory_space<vmem>>, vector<16x96xf32>
    tpu.vector_store %arg7[%c0_6, %c0_7], %9 {strides = array<i32>} : memref<16x96xf32, #tpu.memory_space<vmem>>, vector<16x96xf32>,
    %c0_i32_8 = arith.constant 0 : i32
    %11 = arith.cmpi eq, %arg2, %c0_i32_8 : i32
    %12 = arith.extui %11 : i1 to i32
    %c0_i32_9 = arith.constant 0 : i32
    %13 = arith.cmpi ne, %12, %c0_i32_9 : i32
    scf.if %13 {
      %c0_10 = arith.constant 0 : index
      %c0_11 = arith.constant 0 : index
      %14 = vector.load %arg7[%c0_10, %c0_11] : memref<16x96xf32, #tpu.memory_space<vmem>>, vector<16x96xf32>
      %c0_12 = arith.constant 0 : index
      %c0_13 = arith.constant 0 : index
      %15 = vector.load %arg5[%c0_12, %c0_13] : memref<1x96xf32, #tpu.memory_space<vmem>>, vector<1x96xf32>
      %16 = vector.broadcast %15 : vector<1x96xf32> to vector<16x96xf32>
      %17 = arith.addf %14, %16 : vector<16x96xf32>
      %18 = arith.truncf %17 : vector<16x96xf32> to vector<16x96xbf16>
      %c0_14 = arith.constant 0 : index
      %c0_15 = arith.constant 0 : index
      %19 = vector.load %arg6[%c0_14, %c0_15] : memref<16x96xbf16, #tpu.memory_space<vmem>>, vector<16x96xbf16>
      tpu.vector_store %arg6[%c0_14, %c0_15], %18 {strides = array<i32>} : memref<16x96xbf16, #tpu.memory_space<vmem>>, vector<16x96xbf16>,
    } else {
    }
    return
  }
  func.func @transform_0(%arg0: i32, %arg1: i32, %arg2: i32) -> (i32, i32) {
    %c0_i32 = arith.constant 0 : i32
    return %arg0, %arg2 : i32, i32
  }
  func.func @transform_1(%arg0: i32, %arg1: i32, %arg2: i32) -> (i32, i32) {
    %c0_i32 = arith.constant 0 : i32
    return %arg2, %arg1 : i32, i32
  }
  func.func @transform_2(%arg0: i32, %arg1: i32, %arg2: i32) -> (i32, i32) {
    %c0_i32 = arith.constant 0 : i32
    %c0_i32_0 = arith.constant 0 : i32
    return %c0_i32, %arg1 : i32, i32
  }
  func.func @transform_3(%arg0: i32, %arg1: i32, %arg2: i32) -> (i32, i32) {
    %c0_i32 = arith.constant 0 : i32
    return %arg0, %arg1 : i32, i32
  }
}

</mosaic_0001>

<bundles_post_ra>
// kernel: tpu_custom_call.1
= control target key start
LH: loop header
LB: loop body
LE: loop exit
PB: predicated region body
PF: predicated region fallthrough
CT: control target
= control target key end

     0   :  { %8 = vsyncpa [#allocation4], 0  ;;  %s325_s0 = inlined_call_operand.hbm [shape: f32[16,32], index: 0, kind: input, shape index: {}]   ;;  %s326_s1 = inlined_call_operand.hbm [shape: f32[32,96], index: 1, kind: input, shape index: {}]   ;;  %s327_s2 = inlined_call_operand.vmem [shape: f32[1,96], index: 2, kind: input, shape index: {}]   ;;  %s328_s3 = inlined_call_operand.hbm [shape: bf16[16,96], index: 3, kind: output, shape index: {}]  }
   0x1   :  { %9 = vsyncpa [#allocation7], 0 }
   0x2   :  { %10 = vsyncpa [#allocation5], 0  ;;  %s253_s12 = smov [#allocation3]   ;;  %s181_s16 = scalar_lea.hbm %s325_s0, 256 }
   0x3   :  { %s16_s13 = sshll.u32 %s253_s12, 4  ;;  %p182_p0 = scmp.ne.s32.totalorder %s325_s0, %s181_s16  ;;  %s17_s13 = int_to_ptr.vmem [resolvable:$true] %s16_s13 }
   0x4   :  { %p185_p1 = scmp.lt.u32.totalorder %s181_s16, %s325_s0 }
   0x6   :  { %p187_p2 = pnand %p185_p1, %p182_p0 }
   0x8   :  { %190 = shalt.err (!%p187_p2)
}
   0x9   :  { %s191_s21 = scalar_lea.vmem %s17_s13, 256  ;;  %p196_p4 = scmp.lt.s32.totalorder %s17_s13, %s17_s13 }
   0xa   :  { %p192_p3 = scmp.ne.s32.totalorder %s17_s13, %s191_s21  ;;  %p197_p5 = scmp.lt.s32.totalorder %s191_s21, %s191_s21 }
   0xc   :  { %p198_p6 = por %p197_p5, %p196_p4 }
   0xe   :  { %p199_p7 = pnand %p198_p6, %p192_p3 }
  0x10   :  { %202 = shalt.err (!%p199_p7)
}
  0x11   :  { %s254_s22 = smov 128   ;;  %s255_s23 = smov 8  }
  0x12   :  { %22 = dma.hbm_to_vmem [thread:$0]  %s325_s0, 256, %s17_s13, [#allocation4], %s254_s22, %s254_s22, %s255_s23  }
  0x13   :  { %s256_s26 = smov [#allocation6]   ;;  %s203_s30 = scalar_lea.hbm %s326_s1, 512 }
  0x14   :  { %s28_s27 = sshll.u32 %s256_s26, 4  ;;  %p204_p8 = scmp.ne.s32.totalorder %s326_s1, %s203_s30  ;;  %s29_s27 = int_to_ptr.vmem [resolvable:$true] %s28_s27 }
  0x15   :  { %p207_p9 = scmp.lt.u32.totalorder %s203_s30, %s326_s1 }
  0x17   :  { %p209_p10 = pnand %p207_p9, %p204_p8 }
  0x19   :  { %212 = shalt.err (!%p209_p10)
}
  0x1a   :  { %s213_s8 = scalar_lea.vmem %s29_s27, 512  ;;  %p218_p12 = scmp.lt.s32.totalorder %s29_s27, %s29_s27 }
  0x1b   :  { %p214_p11 = scmp.ne.s32.totalorder %s29_s27, %s213_s8  ;;  %p219_p13 = scmp.lt.s32.totalorder %s213_s8, %s213_s8 }
  0x1d   :  { %p220_p0 = por %p219_p13, %p218_p12 }
  0x1f   :  { %p221_p1 = pnand %p220_p0, %p214_p11 }
  0x21   :  { %224 = shalt.err (!%p221_p1)
}
  0x22   :  { %34 = dma.hbm_to_vmem [thread:$0]  %s326_s1, 512, %s29_s27, [#allocation7], %s254_s22, %s254_s22, %s255_s23  }
  0x23   :  { %247 = dma.done.wait [#allocation4], 256  }
  0x24   :  { %248 = vsyncadd [#allocation4], 4294967040 }
  0x25   :  { %249 = dma.done.wait [#allocation7], 512  }
  0x26   :  { %250 = vsyncadd [#allocation7], 4294966784  ;;  %vm48_vm0 = vcmask 785408   ;;  %v257_v0 = vmov 0.0   ;;  %vm258_vm1 = vmmov 0   ;;  %v56_v1 = vld [vmem:[#allocation6] sm:$0xff] }
  0x27   :  { %49 = vst.msk [vmem:[#allocation2] sm:$0xff] %vm48_vm0, %v257_v0  ;;  %50 = vst.msk [vmem:[#allocation2 + $0x8] sm:$0xff] %vm48_vm0, %v257_v0  ;;  %164 = vmatprep.subr.bf16.mxu0 %v257_v0  ;;  %168 = vmatprep.mubr.msk.bf16.mxu0 %vm258_vm1, %v257_v0  ;;  %v57_v2 = vld [vmem:[#allocation6 + $0x8] sm:$0xff]  ;;  %v58_v3 = vld [vmem:[#allocation6 + $0x10] sm:$0xff]  ;;  %vm62_vm2 = vcmask 261120   ;;  %s259_s11 = smov [#allocation8]  }
  0x28   :  { %v60_v4 = vpack.c.bf16 %v57_v2, %v56_v1  ;;  %v59_v5 = vld [vmem:[#allocation6 + $0x18] sm:$0xff]  ;;  %v53_v7 = vld [vmem:[#allocation3] sm:$0xff]  ;;  %v156_v18 = vld [vmem:[%s327_s2] ss:$0 sm:$0xff]  ;;  %s142_s12 = sshll.u32 %s259_s11, 4  ;;  %vm134_vm3 = vcmask 781312   ;;  %s143_s12 = int_to_ptr.vmem [resolvable:$true] %s142_s12 }
  0x29   :  { %v61_v6 = vpack.c.bf16 %v59_v5, %v58_v3  ;;  %v54_v8 = vld [vmem:[#allocation3 + $0x8] sm:$0xff]  ;;  %s225_s13 = scalar_lea.vmem %s143_s12, 128  ;;  %p230_p3 = scmp.lt.s32.totalorder %s143_s12, %s143_s12 }
  0x2a   :  { %165 = vmatpush3.bf16.msra.mxu0 %v60_v4  ;;  %v55_v9 = vpack.c.bf16 %v54_v8, %v53_v7  ;;  %p226_p2 = scmp.ne.s32.totalorder %s143_s12, %s225_s13  ;;  %p231_p4 = scmp.lt.s32.totalorder %s225_s13, %s225_s13 }
  0x2b   :  { %166 = vmatprep.subr.bf16.mxu0 %v257_v0 }
  0x2c   :  { %p232_p5 = por %p231_p4, %p230_p3 }
  0x2e   :  { %167 = vmatpush3.bf16.msra.mxu0 %v61_v6  ;;  %v51_v10 = vld [vmem:[#allocation2] sm:$0xff]  ;;  %v52_v12 = vld [vmem:[#allocation2 + $0x8] sm:$0xff]  ;;  %p233_p6 = pnand %p232_p5, %p226_p2 }
  0x31   :  { %169 = vmatmul.mubr.msk.bf16.vlgmr.msra.gmra.mrb[0].mxu0 %vm62_vm2, %v55_v9 }
 0x104   :  { %v100_v11 = vpop.f32.mrb[0].mxu0 }
 0x105   :  { %v107_v13 = vadd.f32 %v100_v11, %v51_v10  ;;  %v170_v14 = vpop.f32.mrb[1].mxu0 }
 0x106   :  { %v103_v15 = vpop.f32.mrb[2].mxu0 }
 0x107   :  { %110 = vst.msk [vmem:[#allocation2] sm:$0xff] %vm48_vm0, %v107_v13  ;;  %v108_v16 = vadd.f32 %v103_v15, %v52_v12  ;;  %v171_v17 = vpop.f32.mrb[3].mxu0 }
 0x109   :  { %111 = vst.msk [vmem:[#allocation2 + $0x8] sm:$0xff] %vm48_vm0, %v108_v16 }
 0x10e   :  { %v115_v19 = vld [vmem:[#allocation2] sm:$0xff] }
 0x10f   :  { %v124_v20 = vadd.f32 %v156_v18, %v115_v19 }
 0x110   :  { %v116_v21 = vld [vmem:[#allocation2 + $0x8] sm:$0xff] }
 0x111   :  { %v125_v22 = vadd.f32 %v156_v18, %v116_v21  ;;  %v159_v23 = vpack.c.bf16 %v124_v20, %v124_v20 }
 0x113   :  { %v160_v24 = vpack.c.bf16 %v125_v22, %v125_v22  ;;  %135 = vst.msk [vmem:[#allocation8] sm:$0xf] %vm134_vm3, %v159_v23 }
 0x115   :  { %136 = vst.msk [vmem:[#allocation8 + $0x4] sm:$0xf] %vm134_vm3, %v160_v24 }
 0x116   :  { %236 = shalt.err (!%p233_p6)
}
 0x117   :  { %s237_s15 = scalar_lea.hbm %s328_s3, 128 }
 0x118   :  { %p238_p7 = scmp.ne.s32.totalorder %s328_s3, %s237_s15  ;;  %p241_p8 = scmp.lt.u32.totalorder %s237_s15, %s328_s3 }
 0x11a   :  { %p243_p9 = pnand %p241_p8, %p238_p7 }
 0x11c   :  { %246 = shalt.err (!%p243_p9)
}
 0x11d   :  { %s260_s20 = smov 64   ;;  %s261_s21 = smov 4  }
 0x11e   :  { %148 = dma.vmem_to_hbm [thread:$0]  %s143_s12, 128, %s328_s3, [#allocation5], %s260_s20, %s260_s20, %s261_s21  }
 0x11f   :  { %251 = dma.done.wait [#allocation5], 128  }
 0x120   :  { %252 = vsyncadd [#allocation5], 4294967168 }
 0x121   :  { %152 = vsyncpa [#allocation4], 1 }
 0x122   :  { %153 = vsyncpa [#allocation7], 1 }
 0x123   :  { %154 = vsyncpa [#allocation5], 1 }

</bundles_post_ra>
